<compile_context>
chip_gen: v5e
topology: v5e:2x2
jax: 0.10.0
libtpu: 0.0.40
codegen_flags: <defaults>
</compile_context>

<pallas_src>
import functools
import math

import numpy as np
import jax
import jax.numpy as jnp
from jax.experimental import pallas as pl
from jax.experimental.pallas import tpu as pltpu


# ---------------------------------------------------------------------------
# Host-side interpolation-matrix builders (exact match to PyTorch index math)
# ---------------------------------------------------------------------------
def bilinear_matrix(in_size: int, out_size: int) -> np.ndarray:
    """Row-interp matrix for F.interpolate(mode='bilinear', align_corners=False)."""
    scale = in_size / out_size
    dst = np.arange(out_size)
    src = (dst + 0.5) * scale - 0.5
    src = np.maximum(src, 0.0)                       # PyTorch clamps negative src to 0
    i0 = np.minimum(np.floor(src).astype(np.int64), in_size - 1)
    i1 = np.minimum(i0 + 1, in_size - 1)
    w1 = (src - i0).astype(np.float32)
    w0 = (1.0 - w1).astype(np.float32)
    m = np.zeros((out_size, in_size), dtype=np.float32)
    m[dst, i0] += w0
    m[dst, i1] += w1
    return m


def nearest_indices(in_size: int, out_size: int) -> np.ndarray:
    """Source indices for F.interpolate(mode='nearest') (legacy nearest)."""
    dst = np.arange(out_size)
    return np.minimum(np.floor(dst * (in_size / out_size)).astype(np.int64), in_size - 1)


def _round_up(x: int, m: int) -> int:
    return ((x + m - 1) // m) * m


# ---------------------------------------------------------------------------
# Generation-aware VMEM budgeting and tile selection
# ---------------------------------------------------------------------------
def _vmem_budget():
    """Returns (tile budget bytes, vmem_limit_bytes for the compiler)."""
    cap = None
    try:
        info = pltpu.get_tpu_info()
        cap = int(getattr(info, "vmem_capacity_bytes", 0)) or None
    except Exception:
        cap = None
    if cap is None:
        cap = 64 << 20                     # assume the smallest generation (v7x)
    if cap <= (64 << 20):
        budget = 40 << 20                  # v7x: 64 MiB physical VMEM
    else:
        budget = 96 << 20                  # v5e / v6e: 128 MiB physical VMEM
    limit = min(budget + (16 << 20), cap)
    return budget, limit


def _vmem_estimate(group: int, tile_h: int, h: int, w: int, owp: int) -> int:
    """Per-step VMEM footprint estimate for one grid iteration (bytes)."""
    bpe = 2                                            # bf16 operands
    x_blk = 2 * group * h * w * bpe                    # double-buffered input block
    a_blk = 2 * tile_h * h * bpe
    bt_blk = 2 * w * owp * bpe
    out_blk = 2 * group * tile_h * owp                 # uint8, double-buffered
    scratch = group * h * owp * bpe                    # hi-invariant column-resize cache
    f32_tmp = 4 * max(group * h * owp, tile_h * owp)   # live f32 matmul accumulators
    return x_blk + a_blk + bt_blk + out_blk + scratch + f32_tmp


def _choose_tiling(q, h, w, oh, owp, budget_bytes, tile_cap=1024, group_cap=16):
    """Pick (query-group size, height tile, padded output height) under the budget."""
    oh32 = _round_up(oh, 32)
    # Query-group candidates: divisors of Q; keep Q//g >= 2 so bi/qi retain a
    # megacore-shardable parallel axis (hi must be "arbitrary" for the scratch).
    cands = [g for g in range(1, min(q, group_cap) + 1)
             if q % g == 0 and (q < 2 or q // g >= 2)]
    if not cands:
        cands = [1]
    best = None
    max_n = max(1, oh32 // 32)
    for g in sorted(cands, reverse=True):
        for n in range(1, max_n + 1):
            tile_h = _round_up(-(-oh32 // n), 32)      # 32-row aligned (u8 tiling)
            if tile_h > tile_cap:
                continue
            if _vmem_estimate(g, tile_h, h, w, owp) > budget_bytes:
                continue
            ohp = tile_h * (-(-oh32 // tile_h))        # minimal padding for this tile
            score = (g * tile_h, tile_h, g)
            if best is None or score > best[0]:
                best = (score, g, tile_h, ohp)
            break                                      # largest fitting tile for this g
    if best is None:                                   # ultra-conservative fallback
        return 1, 32, oh32
    return best[1], best[2], best[3]


# ---------------------------------------------------------------------------
# Pallas kernel: fused (bilinear ∘ crop ∘ nearest) resize + logit-space threshold
# ---------------------------------------------------------------------------
def _fused_mask_kernel(idx_ref, x_ref, a_ref, bt_ref, o_ref, tmp_ref, *, logit_t):
    # idx_ref : (bg,)          i32  SMEM: global batch index per group image
    # x_ref   : (G, H, W)      bf16 raw mask logits for G queries of one image
    # a_ref   : (TH, H)        bf16 fused row matrix (nearest∘crop∘bilinear), height tile
    # bt_ref  : (W, OWP)       bf16 fused col matrix, pre-transposed, lane-padded
    # o_ref   : (G, TH, OWP)   u8   final thresholded masks
    # tmp_ref : (G, H, OWP)    bf16 VMEM scratch: hi-invariant column-resized logits
    g, hdim, wdim = x_ref.shape
    owp = bt_ref.shape[1]

    # Column resize X @ Bt once per (image, query-group); the hi axis is
    # "arbitrary" so the scratch stays valid for every subsequent height tile.
    @pl.when(pl.program_id(2) == 0)
    def _():
        xflat = x_ref[...].reshape(g * hdim, wdim)                 # M = G*H fills the MXU
        tmp = jnp.dot(xflat, bt_ref[...], preferred_element_type=jnp.float32)
        tmp_ref[...] = tmp.reshape(g, hdim, owp).astype(tmp_ref.dtype)

    a = a_ref[...]

    # Row resize + threshold, one query at a time (bounded live ranges; M = TH
    # is already MXU-filling).  sigmoid(y) > t  <=>  y > logit(t): pure VPU
    # compare, no EUP transcendentals.
    @pl.loop(0, g)
    def _(gi):
        logits = jnp.dot(a, tmp_ref[gi], preferred_element_type=jnp.float32)  # (TH, OWP)
        o_ref[gi] = (logits > logit_t).astype(jnp.uint8)


def fused_resize_threshold(x_bf, idxs, a, bt, *, logit_t, tile_h, group, vmem_limit):
    """x_bf:[B,Q,H,W] bf16, idxs:[Bg] i32, a:[Bg,OHP,H] bf16, bt:[Bg,W,OWP] bf16
       -> [Bg,Q,OHP,OWP] u8 (padded; crop on host)."""
    b, q, h, w = x_bf.shape
    bg, ohp, _ = a.shape
    owp = bt.shape[2]
    assert q % group == 0 and ohp % tile_h == 0
    grid = (bg, q // group, ohp // tile_h)
    return pl.pallas_call(
        functools.partial(_fused_mask_kernel, logit_t=logit_t),
        out_shape=jax.ShapeDtypeStruct((bg, q, ohp, owp), jnp.uint8),
        grid_spec=pltpu.PrefetchScalarGridSpec(
            num_scalar_prefetch=1,
            grid=grid,
            in_specs=[
                # Full-batch x, gathered through the scalar-prefetched index array
                # (no jnp.take copy of x per shape group).
                pl.BlockSpec((None, group, h, w),
                             lambda bi, qi, hi, idx: (idx[bi], qi, 0, 0)),
                pl.BlockSpec((None, tile_h, h),
                             lambda bi, qi, hi, idx: (bi, hi, 0)),
                pl.BlockSpec((None, w, owp),
                             lambda bi, qi, hi, idx: (bi, 0, 0)),
            ],
            out_specs=pl.BlockSpec((None, group, tile_h, owp),
                                   lambda bi, qi, hi, idx: (bi, qi, hi, 0)),
            scratch_shapes=[pltpu.VMEM((group, h, owp), jnp.bfloat16)],
        ),
        compiler_params=pltpu.CompilerParams(
            # hi reuses the scratch -> "arbitrary"; bi/qi carry megacore parallelism.
            dimension_semantics=("parallel", "parallel", "arbitrary"),
            vmem_limit_bytes=vmem_limit,
        ),
    )(idxs, x_bf, a, bt)


# ---------------------------------------------------------------------------
# Module-equivalent wrapper
# ---------------------------------------------------------------------------
def post_process_segm(results, outputs, orig_target_sizes, max_target_sizes, threshold=0.5):
    assert len(orig_target_sizes) == len(max_target_sizes)
    # Per-image sizes are data-dependent shapes -> resolved on host (glue),
    # exactly as the PyTorch module does via .tolist().
    mts = np.asarray(max_target_sizes)
    ots = np.asarray(orig_target_sizes)
    max_h = int(mts[:, 0].max())
    max_w = int(mts[:, 1].max())

    pred_masks = outputs["pred_masks"]                          # [B, Q, 1, H, W]
    b, q, _, h, w = pred_masks.shape
    # bf16 operands feed the MXU directly; both dots accumulate in f32 and the
    # output is only a sign test against logit(t).
    x_bf = jnp.squeeze(pred_masks, axis=2).astype(jnp.bfloat16)  # [B, Q, H, W]

    logit_t = float(math.log(threshold / (1.0 - threshold)))

    # Batch-wide bilinear matrices (shared by every image).
    wh = bilinear_matrix(h, max_h)                               # [max_h, H]
    ww = bilinear_matrix(w, max_w)                               # [max_w, W]

    budget, vmem_limit = _vmem_budget()

    # Group images with identical padded output geometry / tiling into one
    # pallas_call (avoids a recompile + dispatch per image).
    per_img, groups = [], {}
    for i in range(b):
        img_h, img_w = int(mts[i, 0]), int(mts[i, 1])
        oh, ow = int(ots[i, 0]), int(ots[i, 1])
        owp = _round_up(ow, 128)                                 # lane-dense unmasked stores
        group_sz, tile_h, ohp = _choose_tiling(q, h, w, oh, owp, budget)
        per_img.append((img_h, img_w, oh, ow))
        groups.setdefault((ohp, owp, tile_h, group_sz), []).append(i)

    for (ohp, owp, tile_h, group_sz), idxs in groups.items():
        bg = len(idxs)
        a_np = np.zeros((bg, ohp, h), dtype=np.float32)
        bt_np = np.zeros((bg, w, owp), dtype=np.float32)
        for j, i in enumerate(idxs):
            img_h, img_w, oh, ow = per_img[i]
            rs = nearest_indices(img_h, oh)                      # rows within the crop
            cs = nearest_indices(img_w, ow)                      # cols within the crop
            a_np[j, :oh, :] = wh[rs]                             # Sh @ Wh[:img_h]
            bt_np[j, :, :ow] = ww[cs].T                          # (Sw @ Ww[:img_w])^T
            # NOTE: padded rows/cols are zero -> logit 0 in the pad region; for
            # thresholds < 0.5 those would read as 1, but they are cropped below.
        out = fused_resize_threshold(
            x_bf,
            jnp.asarray(np.asarray(idxs, dtype=np.int32)),
            jnp.asarray(a_np, dtype=jnp.bfloat16),
            jnp.asarray(bt_np, dtype=jnp.bfloat16),
            logit_t=logit_t, tile_h=tile_h, group=group_sz, vmem_limit=vmem_limit)
        # Crop after the device->host transfer: the device output stays padded /
        # lane-dense and no second HBM round trip is spent on a slice copy.
        out_np = np.asarray(jax.block_until_ready(out))          # [bg, Q, OHP, OWP] u8
        for j, i in enumerate(idxs):
            _, _, oh, ow = per_img[i]
            results[i]["masks"] = out_np[j, :, :oh, :ow][:, None, :, :]  # [Q,1,oh,ow] u8
    return results


# ---------------------------------------------------------------------------
# Pure-numpy float64 reference of the PyTorch pipeline (sanity check only)
# ---------------------------------------------------------------------------
def _reference(pred_masks, mts, ots, threshold):
    b, qn, _, h, w = pred_masks.shape
    max_h = int(mts[:, 0].max())
    max_w = int(mts[:, 1].max())
    wh = bilinear_matrix(h, max_h).astype(np.float64)
    ww = bilinear_matrix(w, max_w).astype(np.float64)
    x = pred_masks[:, :, 0].astype(np.float64)
    logit_t = math.log(threshold / (1.0 - threshold))
    masks, logits = [], []
    for i in range(b):
        img_h, img_w = int(mts[i, 0]), int(mts[i, 1])
        oh, ow = int(ots[i, 0]), int(ots[i, 1])
        y = np.einsum("ah,qhw,bw->qab", wh, x[i], ww)            # bilinear resize
        yc = y[:, :img_h, :img_w]                                # crop
        rs = nearest_indices(img_h, oh)
        cs = nearest_indices(img_w, ow)
        ysel = yc[:, rs][:, :, cs][:, None]                      # nearest resize + channel
        masks.append((ysel > logit_t).astype(np.uint8))          # == sigmoid(y) > threshold
        logits.append(ysel)
    return masks, logits


# ---------------------------------------------------------------------------
if __name__ == "__main__":
    key = jax.random.PRNGKey(0)
    B, Q, H, W = 3, 3, 16, 16
    pred_masks = jax.random.normal(key, (B, Q, 1, H, W), dtype=jnp.float32)
    max_target_sizes = jnp.array([[20, 24], [18, 22], [16, 30]], dtype=jnp.int32)
    orig_target_sizes = jnp.array([[40, 48], [36, 44], [200, 160]], dtype=jnp.int32)

    results = [{} for _ in range(B)]
    outputs = {"pred_masks": pred_masks}
    results = post_process_segm(results, outputs, orig_target_sizes, max_target_sizes,
                                threshold=0.5)

    ref_masks, ref_logits = _reference(np.asarray(pred_masks),
                                       np.asarray(max_target_sizes),
                                       np.asarray(orig_target_sizes), 0.5)
    logit_t = 0.0
    eps = 0.08        # bf16-operand rounding band around the decision boundary
    for i in range(B):
        got = np.asarray(results[i]["masks"])
        assert got.dtype == np.uint8 and got.ndim == 4 and got.shape[1] == 1
        assert got.shape == ref_masks[i].shape, (got.shape, ref_masks[i].shape)
        # Exact match everywhere the f64 logit is clearly away from the threshold.
        far = np.abs(ref_logits[i] - logit_t) > eps
        assert np.array_equal(got[far], ref_masks[i][far]), \
            f"image {i}: mismatch away from threshold"
        # Only near-threshold pixels may flip under bf16 operands; keep it small.
        mismatch = float(np.mean(got != ref_masks[i]))
        assert mismatch < 0.03, f"image {i}: near-threshold flip fraction {mismatch}"
    print("KERNEL_OK")
</pallas_src>

<mosaic_0001>
module attributes {stable_mosaic.version = 11 : i64} {
  func.func @_fused_mask_kernel(%arg0: i32, %arg1: i32, %arg2: i32, %arg3: memref<2xi32, #tpu.memory_space<smem>>, %arg4: memref<1x1x16x16xbf16, #tpu.memory_space<vmem>>, %arg5: memref<1x64x16xbf16, #tpu.memory_space<vmem>>, %arg6: memref<1x16x128xbf16, #tpu.memory_space<vmem>>, %arg7: memref<1x1x64x128xi8, #tpu.memory_space<vmem>>, %arg8: memref<1x16x128xbf16, #tpu.memory_space<vmem>>) attributes {dimension_semantics = [#tpu.dimension_semantics<parallel>, #tpu.dimension_semantics<parallel>, #tpu.dimension_semantics<arbitrary>], iteration_bounds = array<i64: 2, 3, 1>, scalar_prefetch = 1 : i64, scratch_operands = 1 : i64, tpu.core_type = #tpu.core_type<tc>, window_params = [{transform_indices = @transform_0, window_bounds = array<i64: 1, 1, 16, 16>}, {transform_indices = @transform_1, window_bounds = array<i64: 1, 64, 16>}, {transform_indices = @transform_2, window_bounds = array<i64: 1, 16, 128>}, {transform_indices = @transform_3, window_bounds = array<i64: 1, 1, 64, 128>}]} {
    %c0_i32 = arith.constant 0 : i32
    %0 = arith.cmpi eq, %arg2, %c0_i32 : i32
    %1 = arith.extui %0 : i1 to i32
    %c0_i32_0 = arith.constant 0 : i32
    %2 = arith.cmpi ne, %1, %c0_i32_0 : i32
    scf.if %2 {
      %c0_12 = arith.constant 0 : index
      %c0_13 = arith.constant 0 : index
      %c0_14 = arith.constant 0 : index
      %c0_15 = arith.constant 0 : index
      %18 = vector.load %arg4[%c0_12, %c0_13, %c0_14, %c0_15] : memref<1x1x16x16xbf16, #tpu.memory_space<vmem>>, vector<1x1x16x16xbf16>
      %19 = vector.shape_cast %18 : vector<1x1x16x16xbf16> to vector<1x16x16xbf16>
      %20 = vector.shape_cast %19 : vector<1x16x16xbf16> to vector<16x16xbf16>
      %c0_16 = arith.constant 0 : index
      %c0_17 = arith.constant 0 : index
      %c0_18 = arith.constant 0 : index
      %21 = vector.load %arg6[%c0_16, %c0_17, %c0_18] : memref<1x16x128xbf16, #tpu.memory_space<vmem>>, vector<1x16x128xbf16>
      %22 = vector.shape_cast %21 : vector<1x16x128xbf16> to vector<16x128xbf16>
      %cst_19 = arith.constant dense<0.000000e+00> : vector<16x128xf32>
      %23 = tpu.matmul %20, %22, %cst_19 {dimension_numbers = #tpu.dot_dimension_numbers<[1], [0], [0], [1], [0, 0, 1, 1], [], []>} : vector<16x16xbf16>, vector<16x128xbf16>, vector<16x128xf32> -> vector<16x128xf32>
      %24 = vector.shape_cast %23 : vector<16x128xf32> to vector<1x16x128xf32>
      %25 = arith.truncf %24 : vector<1x16x128xf32> to vector<1x16x128xbf16>
      %c0_20 = arith.constant 0 : index
      %c0_21 = arith.constant 0 : index
      %c0_22 = arith.constant 0 : index
      %26 = vector.load %arg8[%c0_20, %c0_21, %c0_22] : memref<1x16x128xbf16, #tpu.memory_space<vmem>>, vector<1x16x128xbf16>
      tpu.vector_store %arg8[%c0_20, %c0_21, %c0_22], %25 {strides = array<i32>} : memref<1x16x128xbf16, #tpu.memory_space<vmem>>, vector<1x16x128xbf16>,
    } else {
    }
    %c0 = arith.constant 0 : index
    %c0_1 = arith.constant 0 : index
    %c0_2 = arith.constant 0 : index
    %3 = vector.load %arg5[%c0, %c0_1, %c0_2] : memref<1x64x16xbf16, #tpu.memory_space<vmem>>, vector<1x64x16xbf16>
    %4 = vector.shape_cast %3 : vector<1x64x16xbf16> to vector<64x16xbf16>
    %c0_i32_3 = arith.constant 0 : i32
    %c1_i32 = arith.constant 1 : i32
    %5 = arith.muli %c0_i32_3, %c1_i32 : i32
    %c0_i32_4 = arith.constant 0 : i32
    %6 = arith.addi %c0_i32_4, %5 : i32
    %7 = arith.index_cast %6 : i32 to index
    %c0_5 = arith.constant 0 : index
    %c0_6 = arith.constant 0 : index
    %8 = vector.load %arg8[%7, %c0_5, %c0_6] : memref<1x16x128xbf16, #tpu.memory_space<vmem>>, vector<1x16x128xbf16>
    %9 = vector.shape_cast %8 : vector<1x16x128xbf16> to vector<16x128xbf16>
    %cst = arith.constant dense<0.000000e+00> : vector<64x128xf32>
    %10 = tpu.matmul %4, %9, %cst {dimension_numbers = #tpu.dot_dimension_numbers<[1], [0], [0], [1], [0, 0, 1, 1], [], []>} : vector<64x16xbf16>, vector<16x128xbf16>, vector<64x128xf32> -> vector<64x128xf32>
    %cst_7 = arith.constant 0.000000e+00 : f32
    %11 = vector.broadcast %cst_7 : f32 to vector<64x128xf32>
    %12 = arith.cmpf ogt, %10, %11 : vector<64x128xf32>
    %13 = arith.extui %12 : vector<64x128xi1> to vector<64x128xi8>
    %c0_8 = arith.constant 0 : index
    %14 = arith.index_cast %6 : i32 to index
    %c0_9 = arith.constant 0 : index
    %c0_10 = arith.constant 0 : index
    %15 = vector.load %arg7[%c0_8, %14, %c0_9, %c0_10] : memref<1x1x64x128xi8, #tpu.memory_space<vmem>>, vector<1x1x64x128xi8>
    %16 = vector.shape_cast %15 : vector<1x1x64x128xi8> to vector<64x128xi8>
    %17 = vector.shape_cast %13 : vector<64x128xi8> to vector<1x1x64x128xi8>
    tpu.vector_store %arg7[%c0_8, %14, %c0_9, %c0_10], %17 {strides = array<i32>} : memref<1x1x64x128xi8, #tpu.memory_space<vmem>>, vector<1x1x64x128xi8>,
    %c1_i32_11 = arith.constant 1 : i32
    return
  }
  func.func @transform_0(%arg0: i32, %arg1: i32, %arg2: i32, %arg3: memref<2xi32, #tpu.memory_space<smem>>) -> (i32, i32, i32, i32) {
    %0 = arith.index_cast %arg0 : i32 to index
    %1 = memref.load %arg3[%0] : memref<2xi32, #tpu.memory_space<smem>>
    %c0_i32 = arith.constant 0 : i32
    %c0_i32_0 = arith.constant 0 : i32
    %c0_i32_1 = arith.constant 0 : i32
    return %1, %arg1, %c0_i32, %c0_i32_0 : i32, i32, i32, i32
  }
  func.func @transform_1(%arg0: i32, %arg1: i32, %arg2: i32, %arg3: memref<2xi32, #tpu.memory_space<smem>>) -> (i32, i32, i32) {
    %c0_i32 = arith.constant 0 : i32
    %c0_i32_0 = arith.constant 0 : i32
    return %arg0, %arg2, %c0_i32 : i32, i32, i32
  }
  func.func @transform_2(%arg0: i32, %arg1: i32, %arg2: i32, %arg3: memref<2xi32, #tpu.memory_space<smem>>) -> (i32, i32, i32) {
    %c0_i32 = arith.constant 0 : i32
    %c0_i32_0 = arith.constant 0 : i32
    %c0_i32_1 = arith.constant 0 : i32
    return %arg0, %c0_i32, %c0_i32_0 : i32, i32, i32
  }
  func.func @transform_3(%arg0: i32, %arg1: i32, %arg2: i32, %arg3: memref<2xi32, #tpu.memory_space<smem>>) -> (i32, i32, i32, i32) {
    %c0_i32 = arith.constant 0 : i32
    %c0_i32_0 = arith.constant 0 : i32
    return %arg0, %arg1, %arg2, %c0_i32 : i32, i32, i32, i32
  }
}

</mosaic_0001>

<bundles_post_ra>
// kernel: tpu_custom_call.1
= control target key start
LH: loop header
LB: loop body
LE: loop exit
PB: predicated region body
PF: predicated region fallthrough
CT: control target
= control target key end

     0   :  { %s944_s18 = smov [#allocation4]   ;;  %s1164_s0 = inlined_call_operand.vmem [shape: s32[2], index: 0, kind: input, shape index: {}]   ;;  %s1165_s1 = inlined_call_operand.vmem [shape: bf16[3,3,16,16], index: 1, kind: input, shape index: {}]   ;;  %s1166_s2 = inlined_call_operand.vmem [shape: bf16[2,64,16], index: 2, kind: input, shape index: {}]   ;;  %s1167_s3 = inlined_call_operand.hbm [shape: bf16[2,16,128], index: 3, kind: input, shape index: {}]   ;;  %s1168_s4 = inlined_call_operand.hbm [shape: u8[2,3,64,128], index: 4, kind: output, shape index: {}]  }
   0x1   :  { %s10_s17 = sshll.u32 %s1164_s0, 4  ;;  %s11_s17 = int_to_ptr.vmem [resolvable:$true] %s10_s17 }
   0x2   :  { %13 = dma.vmem_to_smem %s11_s17, 16, %s944_s18, [#allocation3] }
   0x3   :  { %890 = dma.done.wait [#allocation3], 16 }
   0x4   :  { %891 = vsyncadd [#allocation3], 4294967280 }
   0x5   :  { %16 = sfence }
   0x6   :  { %17 = vsyncpa [#allocation6], 0 }
   0x7   :  { %19 = vsyncpa [#allocation6 + $0x1], 0 }
   0x8   :  { %20 = vsyncpa [#allocation7], 0 }
   0x9   :  { %22 = vsyncpa [#allocation7 + $0x1], 0  ;;  %s978_s19 = smov 0   ;;  %s980_s20 = smov 0  }
   0xa   :  { %s982_s21 = smov 0   ;;  %s984_s22 = smov 0  }
   0xb   :  { %s986_s23 = smov 0   ;;  %s988_s0 = smov 0  }
   0xc   :  { %s990_s24 = smov 0   ;;  %s992_s25 = smov 0  }
   0xd   :  { %s994_s26 = smov 0   ;;  %s996_s27 = smov 0  }
   0xe   :  { %s998_s28 = smov 0  }
   0xf LB: > { %1173 = sst [smem:[#allocation12_spill]] %s934_s26  ;;  %s598_s29 = sadd.s32 4294967295, %s942_s28   ;;  %s942_s28 = sphi %s998_s28, %s28_s28   ;;  %s938_s27 = sphi %s996_s27, %s1184_s27   ;;  %s934_s26 = sphi %s994_s26, %s1183_s26   ;;  %s930_s25 = sphi %s992_s25, %s1182_s25   ;;  %s926_s24 = sphi %s990_s24, %s1181_s24   ;;  %s922_s0 = sphi %s988_s0, %s1190_s0   ;;  %s918_s23 = sphi %s986_s23, %s1189_s23   ;;  %s914_s22 = sphi %s984_s22, %s1188_s22   ;;  %s910_s21 = sphi %s982_s21, %s1187_s21   ;;  %s906_s20 = sphi %s980_s20, %s1186_s20   ;;  %s902_s19 = sphi %s978_s19, %s1185_s19  }
  0x10   : > { %1174 = sst [smem:[#allocation13_spill]] %s938_s27  ;;  %s599_s30 = sadd.s32 4294967294, %s942_s28  }
  0x11   : > { %s43_s5 = sadd.s32 1, %s934_s26  ;;  %s47_s6 = sadd.s32 1, %s938_s27 }
  0x12   : > { %p45_p0 = scmp.ge.s32.totalorder %s43_s5, 3  ;;  %s112_s7 = sadd.s32 1, %s922_s0 }
  0x13   : > { %p119_p1 = scmp.ne.s32.totalorder %s922_s0, %s918_s23  ;;  %p120_p2 = scmp.eq.s32.totalorder %s942_s28, 0 }
  0x14   : > { %s1192_s5 = smov (%p45_p0, %s43_s5), 0  ;;  %s1194_s6 = smov (!%p45_p0, %s47_s6), %s938_s27 }
  0x15   : > { %1175 = sst [smem:[#allocation14_spill]] %s1192_s5  ;;  %p1042_p3 = por %p120_p2, %p119_p1 }
  0x16   : > { %p125_p4 = scmp.ne.s32.totalorder %s918_s23, %s914_s22  ;;  %p49_p5 = scmp.ge.s32.totalorder %s1194_s6, 2 }
  0x17   : > { %p126_p6 = scmp.eq.s32.totalorder %s598_s29, 0  ;;  %s136_s9 = ssub.s32 %s934_s26, %s1192_s5 }
  0x18   : > { %s142_s10 = sadd.s32 1, %s910_s21  ;;  %s1196_s6 = smov (%p49_p5, %s1194_s6), 0 }
  0x19   : > { %1177 = sst [smem:[#allocation15_spill]] %s1196_s6  ;;  %p1052_p7 = por %p126_p6, %p125_p4 }
  0x1a   : > { %p152_p8 = scmp.ne.s32.totalorder %s910_s21, %s906_s20  ;;  %s109_s12 = ssub.s32 %s938_s27, %s1196_s6 }
  0x1b   : > { %p153_p9 = scmp.eq.s32.totalorder %s598_s29, 5  ;;  %p110_p10 = scmp.eq.s32.totalorder %s109_s12, 0 }
  0x1c   : > { %s137_s13 = sor.u32 %s136_s9, %s109_s12  ;;  %p158_p13 = scmp.ne.s32.totalorder %s906_s20, %s902_s19 }
  0x1d   : > { %p140_p11 = scmp.eq.s32.totalorder %s137_s13, 0  ;;  %p1060_p12 = por %p153_p9, %p152_p8 }
  0x1e   : > { %s1065_s15 = scalar_select %p110_p10, %s922_s0, %s112_s7  }
  0x1f   : > { %s1068_s16 = scalar_select %p140_p11, %s910_s21, %s142_s10  }
  0x20   : > { %p159_p0 = scmp.eq.s32.totalorder %s599_s30, 5  ;;  %p680_p1 = scmp.lt.s32.totalorder %s942_s28, 6 }
  0x21   : > { %s206_s18 = sand.u32 1, %s922_s0   ;;  %s650_s29 = sshll.u32 %s938_s27, 3 }
  0x22   : > { %p1073_p2 = por %p159_p0, %p158_p13  ;;  %s602_s22 = sshll.u32 %s206_s18, 3 }
  0x23   : > { %s215_s13 = scalar_lea.hbm %s1167_s3, %s650_s29  ;;  %s210_s7 = scalar_lea.vmem [#allocation5], %s602_s22 }
  0x24   : > { %s218_s6 = sshll.u32 %s210_s7, 4  ;;  %s216_s5 = sshll.u32 %s215_s13, 4  ;;  %s219_s6 = int_to_ptr.vmem [resolvable:$true] %s218_s6  ;;  %s217_s5 = int_to_ptr.hbm [resolvable:$true] %s216_s5 }
  0x25   : > { %p673_p4 = pnand %p680_p1, %p1042_p3  ;;  %p605_p5 = scmp.ge.s32.totalorder %s942_s28, 1 }
  0x26   : > { %s207_s30 = scalar_lea.sflag [#allocation6], %s206_s18  ;;  %s945_s10 = smov 64  }
  0x27   : > { %s946_s26 = smov 4   ;;  %p226_p6 = scmp.lt.s32.totalorder %s942_s28, 7 }
  0x28   : > { %675 = dma.hbm_to_vmem [thread:$0]  (!%p673_p4), %s217_s5, 128, %s219_s6, %s207_s30, %s945_s10, %s945_s10, %s946_s26  }
  0x29   : > { %p227_p8 = pnand %p605_p5, %p226_p6 }
  0x2a   : > { %s232_s27 = sand.u32 (!%p227_p8), 1, %s918_s23  }
  0x2b   : > { %230 = sbr.rel (%p227_p8) target bundleno = 378 (0x17a), region = 32  ;;  %s606_s9 = sshll.u32 (!%p227_p8), %s232_s27, 3 }
  0x2c   : > { %s233_s29 = scalar_lea.sflag (!%p227_p8), [#allocation6], %s232_s27  ;;  %s236_s22 = scalar_lea.vmem (!%p227_p8), [#allocation5], %s606_s9 }
  0x30   : > { %893 = dma.done.wait (%p1052_p7), %s233_s29, 128  }
  0x31   : > { %895 = vsyncadd (%p1052_p7), %s233_s29, 4294967168  ;;  %s279_s8 = sld [smem:[#allocation4 + %s930_s25]]  ;;  %p282_p3 = scmp.lt.s32.totalorder %s926_s24, 2  ;;  %v653_v0 = vld [vmem:[%s236_s22] sm:$0xff]  ;;  %vm323_vm0 = vcmask 130048   ;;  %v947_v15 = vmov 0  }
  0x32   : > { %334 = vmatpush.bf16.msra.mxu0 %v653_v0  ;;  %p291_p7 = scmp.lt.s32.totalorder %s930_s25, 1  ;;  %s276_s22 = sand.u32 1, %s906_s20  }
  0x33   : > { %s283_s26 = scalar_select %p282_p3, %s926_s24, 2 }
  0x34   : > { %s292_s7 = scalar_select %p291_p7, %s930_s25, 1 }
  0x35   : > { %s608_s5 = sshll.u32 %s283_s26, 1  ;;  %s667_s26 = smul.u32 6, %s930_s25 }
  0x36   : > { %s651_s30 = sshll.u32 %s292_s7, 5  ;;  %s448_s7 = scalar_lea.sflag [#allocation7], %s276_s22 }
  0x37   : > { %p280_p9 = scmp.lt.s32.totalorder %s279_s8, 2  ;;  %s298_s29 = scalar_lea.vmem %s1166_s2, %s651_s30 }
  0x38   : > { %v655_v6 = vld [vmem:[%s298_s29 + $0x8] sm:$0xff]  ;;  %v654_v7 = vld [vmem:[%s298_s29] sm:$0xff]  ;;  %v657_v8 = vld [vmem:[%s298_s29 + $0x18] sm:$0xff] }
  0x39   : > { %s1198_s8 = smov (!%p280_p9, %s279_s8), 2  ;;  %v656_v9 = vld [vmem:[%s298_s29 + $0x10] sm:$0xff] }
  0x3a   : > { %s666_s27 = smul.u32 6, %s1198_s8  ;;  %s607_s8 = sshll.u32 %s276_s22, 4 }
  0x3c   : > { %s286_s6 = sadd.s32 %s666_s27, %s608_s5  ;;  %s646_s5 = sshll.u32 %s926_s24, 1 }
  0x3d   : > { %s609_s18 = sshll.u32 %s286_s6, 2  ;;  %s278_s27 = scalar_lea.vmem [#allocation8], %s607_s8 }
  0x3e   : > { %s288_s11 = scalar_lea.vmem %s1165_s1, %s609_s18  ;;  %s461_s6 = sadd.s32 %s667_s26, %s646_s5 }
  0x3f   : > { %v652_v1 = vld [vmem:[%s288_s11] sm:$0xff]  ;;  %s647_s18 = sshll.u32 %s461_s6, 3  ;;  %s464_s25 = sshll.u32 %s278_s27, 4  ;;  %s465_s25 = int_to_ptr.vmem [resolvable:$true] %s464_s25 }
  0x40   : > { %620 = vmatmul.msk.bf16.vlgmr.msra.gmra.mxu0 %vm323_vm0, %v652_v1  ;;  %s463_s11 = scalar_lea.hbm %s1168_s4, %s647_s18  ;;  %s838_s8 = scalar_lea.hbm %s1168_s4, 96 }
  0x41   : > { %s466_s24 = sshll.u32 %s463_s11, 4  ;;  %s467_s24 = int_to_ptr.hbm [resolvable:$true] %s466_s24 }
  0x42   : > { %s832_s30 = sshra.s32 %s467_s24, 4  ;;  %s833_s30 = int_to_ptr.hbm [resolvable:$true] %s832_s30 }
  0x43   : > { %s834_s10 = scalar_lea.hbm %s833_s30, 16  ;;  %p839_p0 = scmp.lt.s32.totalorder %s833_s30, %s1168_s4 }
  0x44   : > { %p835_p10 = scmp.ne.s32.totalorder %s833_s30, %s834_s10  ;;  %p840_p1 = scmp.lt.s32.totalorder %s838_s8, %s834_s10 }
  0x46   : > { %p836_p11 = pnand %p835_p10, %p1060_p12  ;;  %p841_p4 = por %p840_p1, %p839_p0 }
  0x48   : > { %p837_p13 = pneg %p836_p11 }
  0x4a   : > { %p842_p5 = pnand %p841_p4, %p837_p13 }
  0xbd   : > { %v336_v2 = vpop.f32.mrf.mxu0 }
  0xc5   : > { %v338_v3 = vpop.f32.mrf.mxu0 }
  0xc6   : > { %v662_v4 = vpack.c.bf16 %v338_v3, %v336_v2 }
  0xc8   : > { %663 = vst [vmem:[#allocation2] sm:$0xff] %v662_v4  }
  0xcf   : > { %v658_v5 = vld [vmem:[#allocation2] sm:$0xff] }
  0xd0   : > { %401 = vmatpush.bf16.msra.mxu1 %v658_v5  ;;  %664 = vmatpush.bf16.msra.mxu2 %v658_v5 }
  0xd1   : > { %665 = vmatpush.bf16.msra.mxu3 %v658_v5 }
  0xd3   : > { %642 = vmatmul.msk.bf16.vlgmr.msra.gmra.mxu2 %vm323_vm0, %v655_v6  ;;  %641 = vmatmul.msk.bf16.vlgmr.msra.gmra.mxu1 %vm323_vm0, %v654_v7 }
  0xd4   : > { %644 = vmatmul.msk.bf16.vlgmr.msra.gmra.mxu3 %vm323_vm0, %v657_v8 }
  0xe3   : > { %643 = vmatmul.msk.bf16.gmra.mxu2 %vm323_vm0, %v656_v9 }
 0x150   : > { %v403_v10 = vpop.f32.mrf.mxu1 }
 0x151   : > { %vm423_vm1 = vcmp.gt.f32.partialorder %v403_v10, 0.0 }
 0x156   : > { %v408_v11 = vpop.f32.mrf.mxu2 }
 0x157   : > { %v418_v14 = vpop.f32.mrf.mxu3  ;;  %vm425_vm4 = vcmp.gt.f32.partialorder %v408_v11, 0.0 }
 0x158   : > { %v405_v12 = vpop.f32.mrf.mxu1  ;;  %vm429_vm8 = vcmp.gt.f32.partialorder %v418_v14, 0.0 }
 0x159   : > { %vm424_vm2 = vcmp.gt.f32.partialorder %v405_v12, 0.0 }
 0x15a   : > { %vm431_vm3 = vmpackc.low %vm424_vm2, %vm423_vm1 }
 0x15b   : > { %v433_v16 = vsel %vm431_vm3, 16711935, %v947_v15 }
 0x15e   : > { %v410_v13 = vpop.f32.mrf.mxu2 }
 0x15f   : > { %vm426_vm5 = vcmp.gt.f32.partialorder %v410_v13, 0.0  ;;  %v420_v21 = vpop.f32.mrf.mxu3 }
 0x160   : > { %vm432_vm6 = vmpackc.low %vm426_vm5, %vm425_vm4  ;;  %vm430_vm9 = vcmp.gt.f32.partialorder %v420_v21, 0.0 }
 0x161   : > { %v434_v17 = vsel %vm432_vm6, 16711935, %v947_v15  ;;  %vm438_vm10 = vmpackc.low %vm430_vm9, %vm429_vm8 }
 0x162   : > { %v435_v18 = vpack.c.b8 %v434_v17, %v433_v16  ;;  %v440_v23 = vsel %vm438_vm10, 16711935, %v947_v15 }
 0x164   : > { %vm436_vm7 = vnez %v435_v18 }
 0x165   : > { %v443_v19 = vsel %vm436_vm7, 16843009, %v947_v15 }
 0x166   : > { %445 = vst [vmem:[%s278_s27] sm:$0xff] %v443_v19  ;;  %v413_v20 = vpop.f32.mrf.mxu2 }
 0x167   : > { %vm427_vm11 = vcmp.gt.f32.partialorder %v413_v20, 0.0 }
 0x16e   : > { %v415_v22 = vpop.f32.mrf.mxu2 }
 0x16f   : > { %vm428_vm12 = vcmp.gt.f32.partialorder %v415_v22, 0.0 }
 0x170   : > { %vm437_vm13 = vmpackc.low %vm428_vm12, %vm427_vm11 }
 0x171   : > { %v439_v24 = vsel %vm437_vm13, 16711935, %v947_v15 }
 0x172   : > { %v441_v25 = vpack.c.b8 %v440_v23, %v439_v24 }
 0x174   : > { %vm442_vm14 = vnez %v441_v25 }
 0x175   : > { %v444_v26 = vsel %vm442_vm14, 16843009, %v947_v15 }
 0x176   : > { %446 = vst [vmem:[%s278_s27 + $0x8] sm:$0xff] %v444_v26 }
 0x177   : > { %845 = shalt.err (!%p842_p5)
}
 0x178   : > { %s948_s22 = smov 128   ;;  %s949_s27 = smov 8  }
 0x179   : > { %670 = dma.vmem_to_hbm [thread:$0]  (%p1060_p12), %s465_s25, 256, %s467_s24, %s448_s7, %s948_s22, %s948_s22, %s949_s27  }
 0x17a PF: > { %p681_p6 = scmp.ge.s32.totalorder %s942_s28, 2  ;;  %s481_s6 = sand.u32 1, %s902_s19  }
 0x17b   : > { %s482_s18 = scalar_lea.sflag [#allocation7], %s481_s6 }
 0x17c   : > { %p677_p8 = pnand %p681_p6, %p1073_p2 }
 0x17e   : > { %p678_p3 = pneg %p677_p8 }
 0x180   : > { %897 = dma.done.wait (%p678_p3), %s482_s18, 256  }
 0x181   : > { %899 = vsyncadd (%p678_p3), %s482_s18, 4294967040  ;;  %s28_s28 = sadd.s32 1, %s942_s28   ;;  %s1181_s24 = sld [smem:[#allocation12_spill]] }
 0x182   : > { %p25_p9 = scmp.ge.s32.totalorder %s28_s28, 8   ;;  %s1182_s25 = sld [smem:[#allocation13_spill]] }
 0x183   : > { %s1183_s26 = sld [smem:[#allocation14_spill]]  ;;  %s1185_s19 = smov %s906_s20 }
 0x184   : > { %s1184_s27 = sld [smem:[#allocation15_spill]]  ;;  %s1186_s20 = smov %s910_s21 }
 0x185   : > { %s1187_s21 = smov %s1068_s16  ;;  %s1188_s22 = smov %s918_s23 }
 0x186   : > { %s1189_s23 = smov %s922_s0  ;;  %s1190_s0 = smov %s1065_s15 }
 0x187   :  { %27 = sbr.rel (!%p25_p9) target bundleno = 15 (0xf), region = 87 }
 0x18c   :  { %488 = vsyncpa [#allocation6], 1 }
 0x18d   :  { %490 = vsyncpa [#allocation6 + $0x1], 1 }
 0x18e   :  { %491 = vsyncpa [#allocation7], 1 }
 0x18f   :  { %493 = vsyncpa [#allocation7 + $0x1], 1 }

</bundles_post_ra>
